<compile_context>
chip_gen: v7x
topology: tpu7x:2x2x1
jax: 0.10.0
libtpu: 0.0.40
codegen_flags: <defaults>
</compile_context>

<pallas_src>
import jax
import jax.numpy as jnp
from jax.experimental import pallas as pl
from jax.experimental.pallas import tpu as pltpu


def _round_up(x, m):
    return ((x + m - 1) // m) * m


def _column_pool_kernel(x_ref, o_ref):
    # x_ref block: (g, H, W_out, stride)   (H, W_out, stride are full extents)
    # o_ref block: (g, 1, W_out)
    x = x_ref[...]
    # Max over the pooling window along width (the lane axis of the block).
    win_max = jnp.max(x, axis=3)                            # (g, H, W_out)
    # Max over the full height (sublane axis of the intermediate), keepdims
    # so the result matches the (g, 1, W_out) output block directly.
    o_ref[...] = jnp.max(win_max, axis=1, keepdims=True)    # (g, 1, W_out)


def column_pooling(f_maps, shape_in, stride=4, *, block_budget_bytes=8 * 1024 * 1024):
    """Pallas TPU equivalent of ColumnPooling.forward."""
    b, c, h, w = f_maps.shape
    k_height = int(shape_in[0])
    # The module pools over the entire height ("columns only") -> output height 1.
    # TODO(synk): general MaxPool2d height windows (H > kernel height) are not
    # implemented; the module's contract is H == shape_in[0].
    assert h == k_height, f"ColumnPooling expects input height {k_height}, got {h}"
    assert w >= stride, f"width {w} smaller than pooling stride {stride}"

    w_out = (w - stride) // stride + 1
    w_valid = w_out * stride
    if w_valid != w:
        # MaxPool2d with ceil_mode=False drops the ragged trailing columns.
        f_maps = f_maps[..., :w_valid]

    rows = b * c
    # Free, contiguous re-view: width windows are contiguous groups of `stride`.
    x4 = f_maps.reshape(rows, h, w_out, stride)

    # ---- row-tile (g) selection from a VMEM budget -------------------------
    itemsize = jnp.dtype(f_maps.dtype).itemsize
    sublane = 32 // itemsize  # 8 for f32, 16 for bf16, 32 for int8
    # Padded VMEM footprint of one leading row of the input block: the last
    # two dims (W_out, stride) are tiled to (sublane, 128).
    in_bytes_per_row = h * _round_up(w_out, sublane) * _round_up(stride, 128) * itemsize
    g_vmem = max(1, block_budget_bytes // in_bytes_per_row)
    # Keep at least 2 grid steps when possible (v7x has 2 TensorCores/chip).
    g_mega = max(1, rows // 2) if rows >= 2 else 1
    g_cap = max(1, min(rows, g_vmem, g_mega))
    # Largest divisor of `rows` not exceeding the cap (avoids partial blocks).
    g = 1
    for cand in range(g_cap, 0, -1):
        if rows % cand == 0:
            g = cand
            break
    grid = (rows // g,)

    out = pl.pallas_call(
        _column_pool_kernel,
        out_shape=jax.ShapeDtypeStruct((rows, 1, w_out), f_maps.dtype),
        grid_spec=pltpu.PrefetchScalarGridSpec(
            num_scalar_prefetch=0,
            grid=grid,
            in_specs=[pl.BlockSpec((g, h, w_out, stride), lambda i: (i, 0, 0, 0))],
            out_specs=pl.BlockSpec((g, 1, w_out), lambda i: (i, 0, 0)),
        ),
        compiler_params=pltpu.CompilerParams(
            dimension_semantics=("parallel",),
            # Explicit limit: above the v5e (16 MiB) / v6e-v7x (32 MiB) scoped
            # defaults, comfortably below v7x's 64 MiB physical VMEM.
            vmem_limit_bytes=48 * 1024 * 1024,
        ),
    )(x4)

    # Free metadata reshape back to the NCHW pooled shape.
    return out.reshape(b, c, 1, w_out)


if __name__ == "__main__":
    key = jax.random.PRNGKey(0)

    # Small NCHW input consistent with the module: batch=2, channels=4,
    # height=16 (== shape_in[0], pooled fully), width=16, stride=4.
    B, C, H, W = 2, 4, 16, 16
    stride = 4
    shape_in = (H, W)
    x = jax.random.normal(key, (B, C, H, W), dtype=jnp.float32)

    y = column_pooling(x, shape_in, stride)
    jax.block_until_ready(y)

    # Reference (same semantics as nn.MaxPool2d((H, stride), stride)):
    w_out = (W - stride) // stride + 1
    ref = jnp.max(
        x[..., : w_out * stride].reshape(B, C, H, w_out, stride), axis=(2, 4)
    )[:, :, None, :]

    assert y.shape == (B, C, 1, w_out), y.shape
    assert y.dtype == x.dtype
    assert bool(jnp.array_equal(y, ref))

    print("KERNEL_OK")
</pallas_src>

<mosaic_0001>
module attributes {stable_mosaic.version = 11 : i64} {
  func.func @_column_pool_kernel(%arg0: i32, %arg1: memref<4x16x4x4xf32, #tpu.memory_space<vmem>>, %arg2: memref<4x1x4xf32, #tpu.memory_space<vmem>>) attributes {dimension_semantics = [#tpu.dimension_semantics<parallel>], iteration_bounds = array<i64: 2>, scalar_prefetch = 0 : i64, scratch_operands = 0 : i64, tpu.core_type = #tpu.core_type<tc>, window_params = [{transform_indices = @transform_0, window_bounds = array<i64: 4, 16, 4, 4>}, {transform_indices = @transform_1, window_bounds = array<i64: 4, 1, 4>}]} {
    %c0 = arith.constant 0 : index
    %c0_0 = arith.constant 0 : index
    %c0_1 = arith.constant 0 : index
    %c0_2 = arith.constant 0 : index
    %0 = vector.load %arg1[%c0, %c0_0, %c0_1, %c0_2] : memref<4x16x4x4xf32, #tpu.memory_space<vmem>>, vector<4x16x4x4xf32>
    %cst = arith.constant dense<0xFF800000> : vector<4x16x4xf32>
    %1 = vector.multi_reduction <maximumf>, %0, %cst [3] : vector<4x16x4x4xf32> to vector<4x16x4xf32>
    %cst_3 = arith.constant dense<0xFF800000> : vector<4x4xf32>
    %2 = vector.multi_reduction <maximumf>, %1, %cst_3 [1] : vector<4x16x4xf32> to vector<4x4xf32>
    %3 = vector.shape_cast %2 : vector<4x4xf32> to vector<4x1x4xf32>
    %c0_4 = arith.constant 0 : index
    %c0_5 = arith.constant 0 : index
    %c0_6 = arith.constant 0 : index
    %4 = vector.load %arg2[%c0_4, %c0_5, %c0_6] : memref<4x1x4xf32, #tpu.memory_space<vmem>>, vector<4x1x4xf32>
    tpu.vector_store %arg2[%c0_4, %c0_5, %c0_6], %3 {strides = array<i32>} : memref<4x1x4xf32, #tpu.memory_space<vmem>>, vector<4x1x4xf32>,
    return
  }
  func.func @transform_0(%arg0: i32) -> (i32, i32, i32, i32) {
    %c0_i32 = arith.constant 0 : i32
    %c0_i32_0 = arith.constant 0 : i32
    %c0_i32_1 = arith.constant 0 : i32
    %c0_i32_2 = arith.constant 0 : i32
    return %arg0, %c0_i32, %c0_i32_0, %c0_i32_1 : i32, i32, i32, i32
  }
  func.func @transform_1(%arg0: i32) -> (i32, i32, i32) {
    %c0_i32 = arith.constant 0 : i32
    %c0_i32_0 = arith.constant 0 : i32
    %c0_i32_1 = arith.constant 0 : i32
    return %arg0, %c0_i32, %c0_i32_0 : i32, i32, i32
  }
}

</mosaic_0001>

<bundles_post_ra>
// kernel: tpu_custom_call.1
= control target key start
LH: loop header
LB: loop body
LE: loop exit
PB: predicated region body
PF: predicated region fallthrough
CT: control target
= control target key end

     0   :  { %s622_s6 = smov 0   ;;  %s976_s0 = inlined_call_operand.vmem [shape: f32[8,16,4,4], index: 0, kind: input, shape index: {}]   ;;  %s977_s1 = inlined_call_operand.vmem [shape: f32[8,1,4], index: 1, kind: output, shape index: {}]  }
   0x1 LB: > { %s584_s7 = sadd.s32 4294967295, %s610_s6   ;;  %p588_p0 = scmp.ge.s32.totalorder %s610_s6, 1  ;;  %s610_s6 = sphi %s622_s6, %s11_s6  }
   0x2   : > { %p89_p1 = scmp.lt.s32.totalorder %s610_s6, 3 }
   0x4   : > { %p90_p2 = pnand %p588_p0, %p89_p1 }
   0x5   : > { %s589_s8 = sshll.u32 (!%p90_p2), %s584_s7, 2  ;;  %vm185_vm0 = vcmask (!%p90_p2), 27648   ;;  %vm378_vm1 = vcmask (!%p90_p2), 1043456   ;;  %vm529_vm2 = vcmask (!%p90_p2), 24576  }
   0x6   : > { %93 = sbr.rel (%p90_p2) target bundleno = 290 (0x122), region = 24  ;;  %p110_p3 = scmp.lt.s32.totalorder (!%p90_p2), %s589_s8, 7 }
   0xd   : > { %s979_s8 = smov (!%p110_p3, %s589_s8), 7 }
   0xe   : > { %s595_s9 = sshll.u32 %s979_s8, 6  ;;  %s119_s15 = scalar_lea.vmem %s977_s1, %s979_s8 }
   0xf   : > { %s636_s12 = scalar_lea.vmem %s976_s0, %s595_s9 }
  0x10   : > { %v123_v0 = vld [vmem:[%s636_s12 + $0x8] sm:$0xf]  ;;  %v121_v1 = vld [vmem:[%s636_s12] sm:$0xf]  ;;  %v124_v2 = vld [vmem:[%s636_s12 + $0xc] sm:$0xf] }
  0x11   : > { %v192_v3 = vsel %vm185_vm0, %v123_v0, -inf  ;;  %v186_v4 = vsel %vm185_vm0, %v121_v1, -inf  ;;  %v122_v5 = vld [vmem:[%s636_s12 + $0x4] sm:$0xf]  ;;  %v195_v6 = vsel %vm185_vm0, %v124_v2, -inf }
  0x12   : > { %193 = vmax.xlane.f32.xlu1 %v192_v3  ;;  %187 = vmax.xlane.f32.xlu0 %v186_v4  ;;  %v189_v7 = vsel %vm185_vm0, %v122_v5, -inf  ;;  %v126_v8 = vld [vmem:[%s636_s12 + $0x14] sm:$0xf]  ;;  %v125_v9 = vld [vmem:[%s636_s12 + $0x10] sm:$0xf] }
  0x13   : > { %v201_v10 = vsel %vm185_vm0, %v126_v8, -inf  ;;  %v198_v11 = vsel %vm185_vm0, %v125_v9, -inf  ;;  %v128_v12 = vld [vmem:[%s636_s12 + $0x1c] sm:$0xf]  ;;  %v127_v13 = vld [vmem:[%s636_s12 + $0x18] sm:$0xf] }
  0x14   : > { %v207_v14 = vsel %vm185_vm0, %v128_v12, -inf  ;;  %v204_v15 = vsel %vm185_vm0, %v127_v13, -inf  ;;  %v130_v16 = vld [vmem:[%s636_s12 + $0x24] sm:$0xf]  ;;  %v129_v17 = vld [vmem:[%s636_s12 + $0x20] sm:$0xf] }
  0x15   : > { %v137_v18 = vld [vmem:[%s636_s12 + $0x40] sm:$0xf]  ;;  %v131_v19 = vld [vmem:[%s636_s12 + $0x28] sm:$0xf]  ;;  %v138_v21 = vld [vmem:[%s636_s12 + $0x44] sm:$0xf] }
  0x16   : > { %196 = vmax.xlane.f32.xlu1 %v195_v6  ;;  %190 = vmax.xlane.f32.xlu0 %v189_v7  ;;  %v153_v20 = vld [vmem:[%s636_s12 + $0x80] sm:$0xf]  ;;  %v139_v22 = vld [vmem:[%s636_s12 + $0x48] sm:$0xf]  ;;  %v154_v23 = vld [vmem:[%s636_s12 + $0x84] sm:$0xf] }
  0x17   : > { %v170_v24 = vld [vmem:[%s636_s12 + $0xc4] sm:$0xf]  ;;  %v169_v25 = vld [vmem:[%s636_s12 + $0xc0] sm:$0xf]  ;;  %v213_v26 = vsel %vm185_vm0, %v130_v16, -inf  ;;  %v210_v27 = vsel %vm185_vm0, %v129_v17, -inf }
  0x18   : > { %v234_v28 = vsel %vm185_vm0, %v137_v18, -inf  ;;  %v216_v29 = vsel %vm185_vm0, %v131_v19, -inf  ;;  %v282_v30 = vsel %vm185_vm0, %v153_v20, -inf  ;;  %v237_v31 = vsel %vm185_vm0, %v138_v21, -inf  ;;  %v160_v36 = vld [vmem:[%s636_s12 + $0x9c] sm:$0xf] }
  0x19   : > { %v671_v32 = vsel %vm185_vm0, %v139_v22, -inf  ;;  %v674_v33 = vsel %vm185_vm0, %v154_v23, -inf  ;;  %v677_v34 = vsel %vm185_vm0, %v170_v24, -inf  ;;  %v680_v35 = vsel %vm185_vm0, %v169_v25, -inf  ;;  %v175_v37 = vld [vmem:[%s636_s12 + $0xd8] sm:$0xf] }
  0x1a   : > { %202 = vmax.xlane.f32.xlu1 %v201_v10  ;;  %199 = vmax.xlane.f32.xlu0 %v198_v11  ;;  %v685_v38 = vsel %vm185_vm0, %v160_v36, -inf  ;;  %v688_v39 = vsel %vm185_vm0, %v175_v37, -inf  ;;  %v176_v40 = vld [vmem:[%s636_s12 + $0xdc] sm:$0xf]  ;;  %v145_v41 = vld [vmem:[%s636_s12 + $0x60] sm:$0xf] }
  0x1b   : > { %v693_v42 = vsel %vm185_vm0, %v176_v40, -inf  ;;  %v696_v43 = vsel %vm185_vm0, %v145_v41, -inf  ;;  %v146_v44 = vld [vmem:[%s636_s12 + $0x64] sm:$0xf]  ;;  %v161_v45 = vld [vmem:[%s636_s12 + $0xa0] sm:$0xf] }
  0x1c   : > { %v701_v46 = vsel %vm185_vm0, %v146_v44, -inf  ;;  %v704_v47 = vsel %vm185_vm0, %v161_v45, -inf  ;;  %v162_v48 = vld [vmem:[%s636_s12 + $0xa4] sm:$0xf]  ;;  %v177_v49 = vld [vmem:[%s636_s12 + $0xe0] sm:$0xf] }
  0x1d   : > { %v709_v50 = vsel %vm185_vm0, %v162_v48, -inf  ;;  %v712_v51 = vsel %vm185_vm0, %v177_v49, -inf  ;;  %v178_v52 = vld [vmem:[%s636_s12 + $0xe4] sm:$0xf]  ;;  %v147_v53 = vld [vmem:[%s636_s12 + $0x68] sm:$0xf] }
  0x1e   : > { %208 = vmax.xlane.f32.xlu1 %v207_v14  ;;  %205 = vmax.xlane.f32.xlu0 %v204_v15  ;;  %v717_v54 = vsel %vm185_vm0, %v178_v52, -inf  ;;  %v720_v55 = vsel %vm185_vm0, %v147_v53, -inf  ;;  %v163_v56 = vld [vmem:[%s636_s12 + $0xa8] sm:$0xf]  ;;  %v132_v57 = vld [vmem:[%s636_s12 + $0x2c] sm:$0xf] }
  0x1f   : > { %v725_v58 = vsel %vm185_vm0, %v163_v56, -inf  ;;  %v728_v59 = vsel %vm185_vm0, %v132_v57, -inf  ;;  %v179_v60 = vld [vmem:[%s636_s12 + $0xe8] sm:$0xf]  ;;  %v148_v61 = vld [vmem:[%s636_s12 + $0x6c] sm:$0xf] }
  0x20   : > { %v733_v62 = vsel %vm185_vm0, %v179_v60, -inf  ;;  %v736_v63 = vsel %vm185_vm0, %v148_v61, -inf  ;;  %v164_v0 = vld [vmem:[%s636_s12 + $0xac] sm:$0xf]  ;;  %v133_v1 = vld [vmem:[%s636_s12 + $0x30] sm:$0xf] }
  0x21   : > { %v741_v2 = vsel %vm185_vm0, %v164_v0, -inf  ;;  %v744_v3 = vsel %vm185_vm0, %v133_v1, -inf  ;;  %v180_v4 = vld [vmem:[%s636_s12 + $0xec] sm:$0xf]  ;;  %v149_v5 = vld [vmem:[%s636_s12 + $0x70] sm:$0xf] }
  0x22   : > { %214 = vmax.xlane.f32.xlu1 %v213_v26  ;;  %211 = vmax.xlane.f32.xlu0 %v210_v27  ;;  %v749_v6 = vsel %vm185_vm0, %v180_v4, -inf  ;;  %v752_v7 = vsel %vm185_vm0, %v149_v5, -inf  ;;  %v165_v8 = vld [vmem:[%s636_s12 + $0xb0] sm:$0xf]  ;;  %v134_v9 = vld [vmem:[%s636_s12 + $0x34] sm:$0xf] }
  0x23   : > { %v757_v10 = vsel %vm185_vm0, %v165_v8, -inf  ;;  %v760_v11 = vsel %vm185_vm0, %v134_v9, -inf  ;;  %v181_v12 = vld [vmem:[%s636_s12 + $0xf0] sm:$0xf]  ;;  %v150_v13 = vld [vmem:[%s636_s12 + $0x74] sm:$0xf] }
  0x24   : > { %v765_v14 = vsel %vm185_vm0, %v181_v12, -inf  ;;  %v768_v15 = vsel %vm185_vm0, %v150_v13, -inf  ;;  %v166_v16 = vld [vmem:[%s636_s12 + $0xb4] sm:$0xf]  ;;  %v135_v17 = vld [vmem:[%s636_s12 + $0x38] sm:$0xf] }
  0x25   : > { %v773_v18 = vsel %vm185_vm0, %v166_v16, -inf  ;;  %v776_v19 = vsel %vm185_vm0, %v135_v17, -inf  ;;  %v182_v20 = vld [vmem:[%s636_s12 + $0xf4] sm:$0xf]  ;;  %v151_v21 = vld [vmem:[%s636_s12 + $0x78] sm:$0xf] }
  0x26   : > { %235 = vmax.xlane.f32.xlu1 %v234_v28  ;;  %217 = vmax.xlane.f32.xlu0 %v216_v29  ;;  %v781_v22 = vsel %vm185_vm0, %v182_v20, -inf  ;;  %v784_v23 = vsel %vm185_vm0, %v151_v21, -inf  ;;  %v167_v24 = vld [vmem:[%s636_s12 + $0xb8] sm:$0xf]  ;;  %v136_v25 = vld [vmem:[%s636_s12 + $0x3c] sm:$0xf] }
  0x27   : > { %v791_v26 = vsel %vm185_vm0, %v167_v24, -inf  ;;  %v794_v27 = vsel %vm185_vm0, %v136_v25, -inf  ;;  %v183_v28 = vld [vmem:[%s636_s12 + $0xf8] sm:$0xf]  ;;  %v152_v29 = vld [vmem:[%s636_s12 + $0x7c] sm:$0xf] }
  0x28   : > { %v184_v36 = vld [vmem:[%s636_s12 + $0xfc] sm:$0xf]  ;;  %v155_v37 = vld [vmem:[%s636_s12 + $0x88] sm:$0xf]  ;;  %v156_v48 = vld [vmem:[%s636_s12 + $0x8c] sm:$0xf] }
  0x29   : > { %v809_v40 = vsel %vm185_vm0, %v184_v36, -inf  ;;  %v288_v45 = vsel %vm185_vm0, %v155_v37, -inf  ;;  %v171_v49 = vld [vmem:[%s636_s12 + $0xc8] sm:$0xf]  ;;  %v291_v52 = vsel %vm185_vm0, %v156_v48, -inf }
  0x2a   : > { %283 = vmax.xlane.f32.xlu1 %v282_v30  ;;  %238 = vmax.xlane.f32.xlu0 %v237_v31  ;;  %v799_v30 = vsel %vm185_vm0, %v183_v28, -inf  ;;  %v802_v31 = vsel %vm185_vm0, %v152_v29, -inf  ;;  %v336_v53 = vsel %vm185_vm0, %v171_v49, -inf  ;;  %v172_v56 = vld [vmem:[%s636_s12 + $0xcc] sm:$0xf] }
  0x2b   : > { %v142_v60 = vld [vmem:[%s636_s12 + $0x54] sm:$0xf]  ;;  %v157_v61 = vld [vmem:[%s636_s12 + $0x90] sm:$0xf]  ;;  %v143_v13 = vld [vmem:[%s636_s12 + $0x58] sm:$0xf] }
  0x2c   : > { %v249_v0 = vsel %vm185_vm0, %v142_v60, -inf  ;;  %v294_v1 = vsel %vm185_vm0, %v157_v61, -inf  ;;  %v158_v4 = vld [vmem:[%s636_s12 + $0x94] sm:$0xf]  ;;  %v173_v5 = vld [vmem:[%s636_s12 + $0xd0] sm:$0xf] }
  0x2d   : > { %v297_v8 = vsel %vm185_vm0, %v158_v4, -inf  ;;  %v342_v9 = vsel %vm185_vm0, %v173_v5, -inf  ;;  %v174_v12 = vld [vmem:[%s636_s12 + $0xd4] sm:$0xf]  ;;  %v252_v17 = vsel %vm185_vm0, %v143_v13, -inf }
  0x2e   : > { %241 = vmax.xlane.f32.xlu1 %v671_v32  ;;  %286 = vmax.xlane.f32.xlu0 %v674_v33  ;;  %v168_v32 = vld [vmem:[%s636_s12 + $0xbc] sm:$0xf]  ;;  %v140_v33 = vld [vmem:[%s636_s12 + $0x4c] sm:$0xf]  ;;  %v345_v16 = vsel %vm185_vm0, %v174_v12, -inf }
  0x2f   : > { %v812_v41 = vsel %vm185_vm0, %v168_v32, -inf  ;;  %v243_v44 = vsel %vm185_vm0, %v140_v33, -inf  ;;  %v144_v20 = vld [vmem:[%s636_s12 + $0x5c] sm:$0xf]  ;;  %v159_v21 = vld [vmem:[%s636_s12 + $0x98] sm:$0xf] }
  0x30   : > { %v255_v24 = vsel %vm185_vm0, %v144_v20, -inf  ;;  %v300_v25 = vsel %vm185_vm0, %v159_v21, -inf }
  0x32   : > { %334 = vmax.xlane.f32.xlu1 %v677_v34  ;;  %331 = vmax.xlane.f32.xlu0 %v680_v35  ;;  %v141_v34 = vld [vmem:[%s636_s12 + $0x50] sm:$0xf]  ;;  %v339_v35 = vsel %vm185_vm0, %v172_v56, -inf }
  0x33   : > { %v246_v57 = vsel %vm185_vm0, %v141_v34, -inf }
  0x36   : > { %244 = vmax.xlane.f32.xlu1 %v243_v44  ;;  %289 = vmax.xlane.f32.xlu0 %v288_v45 }
  0x3a   : > { %292 = vmax.xlane.f32.xlu1 %v291_v52  ;;  %337 = vmax.xlane.f32.xlu0 %v336_v53 }
  0x3e   : > { %340 = vmax.xlane.f32.xlu1 %v339_v35  ;;  %247 = vmax.xlane.f32.xlu0 %v246_v57 }
  0x42   : > { %250 = vmax.xlane.f32.xlu1 %v249_v0  ;;  %295 = vmax.xlane.f32.xlu0 %v294_v1 }
  0x46   : > { %298 = vmax.xlane.f32.xlu1 %v297_v8  ;;  %343 = vmax.xlane.f32.xlu0 %v342_v9 }
  0x4a   : > { %346 = vmax.xlane.f32.xlu1 %v345_v16  ;;  %253 = vmax.xlane.f32.xlu0 %v252_v17 }
  0x4e   : > { %256 = vmax.xlane.f32.xlu1 %v255_v24  ;;  %301 = vmax.xlane.f32.xlu0 %v300_v25 }
  0x52   : > { %304 = vmax.xlane.f32.xlu1 %v685_v38  ;;  %349 = vmax.xlane.f32.xlu0 %v688_v39 }
  0x56   : > { %352 = vmax.xlane.f32.xlu1 %v693_v42  ;;  %259 = vmax.xlane.f32.xlu0 %v696_v43 }
  0x5a   : > { %262 = vmax.xlane.f32.xlu1 %v701_v46  ;;  %307 = vmax.xlane.f32.xlu0 %v704_v47 }
  0x5e   : > { %310 = vmax.xlane.f32.xlu1 %v709_v50  ;;  %355 = vmax.xlane.f32.xlu0 %v712_v51 }
  0x62   : > { %358 = vmax.xlane.f32.xlu1 %v717_v54  ;;  %265 = vmax.xlane.f32.xlu0 %v720_v55 }
  0x66   : > { %313 = vmax.xlane.f32.xlu1 %v725_v58  ;;  %220 = vmax.xlane.f32.xlu0 %v728_v59 }
  0x6a   : > { %361 = vmax.xlane.f32.xlu1 %v733_v62  ;;  %268 = vmax.xlane.f32.xlu0 %v736_v63 }
  0x6e   : > { %316 = vmax.xlane.f32.xlu1 %v741_v2  ;;  %223 = vmax.xlane.f32.xlu0 %v744_v3 }
  0x72   : > { %364 = vmax.xlane.f32.xlu1 %v749_v6  ;;  %271 = vmax.xlane.f32.xlu0 %v752_v7 }
  0x76   : > { %319 = vmax.xlane.f32.xlu1 %v757_v10  ;;  %226 = vmax.xlane.f32.xlu0 %v760_v11 }
  0x7a   : > { %367 = vmax.xlane.f32.xlu1 %v765_v14  ;;  %274 = vmax.xlane.f32.xlu0 %v768_v15 }
  0x7e   : > { %322 = vmax.xlane.f32.xlu1 %v773_v18  ;;  %229 = vmax.xlane.f32.xlu0 %v776_v19 }
  0x82   : > { %370 = vmax.xlane.f32.xlu1 %v781_v22  ;;  %277 = vmax.xlane.f32.xlu0 %v784_v23 }
  0x86   : > { %325 = vmax.xlane.f32.xlu1 %v791_v26  ;;  %232 = vmax.xlane.f32.xlu0 %v794_v27 }
  0x8a   : > { %373 = vmax.xlane.f32.xlu1 %v799_v30  ;;  %280 = vmax.xlane.f32.xlu0 %v802_v31 }
  0x8e   : > { %376 = vmax.xlane.f32.xlu1 %v809_v40  ;;  %328 = vmax.xlane.f32.xlu0 %v812_v41 }
  0x9f   : > { %v194_v38 = vpop.xlane.xlu1 %193  ;;  %v188_v39 = vpop.xlane.xlu0 %187 }
  0xa0   : > { %v379_v46 = vsel %vm378_vm1, %v188_v39, -inf  ;;  %v382_v51 = vsel %vm378_vm1, %v194_v38, -inf }
  0xa3   : > { %v197_v42 = vpop.xlane.xlu1 %196  ;;  %v191_v43 = vpop.xlane.xlu0 %190 }
  0xa4   : > { %v380_v47 = vsel %vm378_vm1, %v191_v43, -inf  ;;  %v384_v59 = vsel %vm378_vm1, %v197_v42, -inf }
  0xa5   : > { %v381_v50 = vmax.f32 %v379_v46, %v380_v47 }
  0xa7   : > { %v383_v54 = vmax.f32 %v381_v50, %v382_v51  ;;  %v203_v55 = vpop.xlane.xlu1 %202  ;;  %v200_v58 = vpop.xlane.xlu0 %199 }
  0xa8   : > { %v386_v63 = vsel %vm378_vm1, %v200_v58, -inf  ;;  %v388_v7 = vsel %vm378_vm1, %v203_v55, -inf }
  0xa9   : > { %v385_v62 = vmax.f32 %v383_v54, %v384_v59 }
  0xab   : > { %v387_v2 = vmax.f32 %v385_v62, %v386_v63  ;;  %v209_v3 = vpop.xlane.xlu1 %208  ;;  %v206_v6 = vpop.xlane.xlu0 %205 }
  0xac   : > { %v390_v11 = vsel %vm378_vm1, %v206_v6, -inf  ;;  %v392_v19 = vsel %vm378_vm1, %v209_v3, -inf }
  0xad   : > { %v389_v10 = vmax.f32 %v387_v2, %v388_v7 }
  0xaf   : > { %v391_v14 = vmax.f32 %v389_v10, %v390_v11  ;;  %v215_v15 = vpop.xlane.xlu1 %214  ;;  %v212_v18 = vpop.xlane.xlu0 %211 }
  0xb0   : > { %v394_v23 = vsel %vm378_vm1, %v212_v18, -inf  ;;  %v396_v29 = vsel %vm378_vm1, %v215_v15, -inf }
  0xb1   : > { %v393_v22 = vmax.f32 %v391_v14, %v392_v19 }
  0xb3   : > { %v395_v26 = vmax.f32 %v393_v22, %v394_v23  ;;  %v236_v27 = vpop.xlane.xlu1 %235  ;;  %v218_v28 = vpop.xlane.xlu0 %217 }
  0xb4   : > { %v398_v31 = vsel %vm378_vm1, %v218_v28, -inf  ;;  %v410_v37 = vsel %vm378_vm1, %v236_v27, -inf }
  0xb5   : > { %v397_v30 = vmax.f32 %v395_v26, %v396_v29 }
  0xb7   : > { %v885_v36 = vmax.f32 %v397_v30, %v398_v31  ;;  %v284_v32 = vpop.xlane.xlu1 %283  ;;  %v239_v33 = vpop.xlane.xlu0 %238 }
  0xb8   : > { %v411_v40 = vsel %vm378_vm1, %v239_v33, -inf  ;;  %v441_v48 = vsel %vm378_vm1, %v284_v32, -inf }
  0xb9   : > { %v412_v41 = vmax.f32 %v410_v37, %v411_v40 }
  0xbb   : > { %v242_v44 = vpop.xlane.xlu1 %241  ;;  %v287_v45 = vpop.xlane.xlu0 %286 }
  0xbc   : > { %v413_v49 = vsel %vm378_vm1, %v242_v44, -inf  ;;  %v442_v52 = vsel %vm378_vm1, %v287_v45, -inf  ;;  %v507_v44 = vlaneseq }
  0xbd   : > { %v414_v53 = vmax.f32 %v412_v41, %v413_v49  ;;  %v443_v56 = vmax.f32 %v441_v48, %v442_v52 }
  0xbf   : > { %v335_v34 = vpop.xlane.xlu1 %334  ;;  %v332_v35 = vpop.xlane.xlu0 %331 }
  0xc0   : > { %v473_v57 = vsel %vm378_vm1, %v335_v34, -inf  ;;  %v472_v60 = vsel %vm378_vm1, %v332_v35, -inf }
  0xc1   : > { %v474_v61 = vmax.f32 %v472_v60, %v473_v57 }
  0xc3   : > { %v245_v0 = vpop.xlane.xlu1 %244  ;;  %v290_v1 = vpop.xlane.xlu0 %289 }
  0xc4   : > { %v415_v6 = vsel %vm378_vm1, %v245_v0, -inf  ;;  %v444_v11 = vsel %vm378_vm1, %v290_v1, -inf }
  0xc5   : > { %v416_v18 = vmax.f32 %v414_v53, %v415_v6  ;;  %v445_v26 = vmax.f32 %v443_v56, %v444_v11 }
  0xc7   : > { %v293_v4 = vpop.xlane.xlu1 %292  ;;  %v338_v5 = vpop.xlane.xlu0 %337 }
  0xc8   : > { %v475_v14 = vsel %vm378_vm1, %v338_v5, -inf  ;;  %v446_v19 = vsel %vm378_vm1, %v293_v4, -inf  ;;  %v508_v5 = vand.u32 127, %v507_v44 }
  0xc9   : > { %v476_v27 = vmax.f32 %v474_v61, %v475_v14  ;;  %v447_v37 = vmax.f32 %v445_v26, %v446_v19 }
  0xcb   : > { %v341_v8 = vpop.xlane.xlu1 %340  ;;  %v248_v9 = vpop.xlane.xlu0 %247 }
  0xcc   : > { %v417_v15 = vsel %vm378_vm1, %v248_v9, -inf  ;;  %v477_v22 = vsel %vm378_vm1, %v341_v8, -inf }
  0xcd   : > { %v418_v28 = vmax.f32 %v416_v18, %v417_v15  ;;  %v478_v40 = vmax.f32 %v476_v27, %v477_v22 }
  0xcf   : > { %v251_v12 = vpop.xlane.xlu1 %250  ;;  %v296_v13 = vpop.xlane.xlu0 %295 }
  0xd0   : > { %v419_v23 = vsel %vm378_vm1, %v251_v12, -inf  ;;  %v448_v31 = vsel %vm378_vm1, %v296_v13, -inf }
  0xd1   : > { %v420_v41 = vmax.f32 %v418_v28, %v419_v23  ;;  %v449_v52 = vmax.f32 %v447_v37, %v448_v31 }
  0xd3   : > { %v299_v16 = vpop.xlane.xlu1 %298  ;;  %v344_v17 = vpop.xlane.xlu0 %343 }
  0xd4   : > { %v479_v32 = vsel %vm378_vm1, %v344_v17, -inf  ;;  %v450_v45 = vsel %vm378_vm1, %v299_v16, -inf }
  0xd5   : > { %v480_v53 = vmax.f32 %v478_v40, %v479_v32  ;;  %v451_v0 = vmax.f32 %v449_v52, %v450_v45 }
  0xd7   : > { %v347_v20 = vpop.xlane.xlu1 %346  ;;  %v254_v21 = vpop.xlane.xlu0 %253 }
  0xd8   : > { %v421_v33 = vsel %vm378_vm1, %v254_v21, -inf  ;;  %v481_v48 = vsel %vm378_vm1, %v347_v20, -inf }
  0xd9   : > { %v422_v56 = vmax.f32 %v420_v41, %v421_v33  ;;  %v482_v1 = vmax.f32 %v480_v53, %v481_v48 }
  0xdb   : > { %v257_v24 = vpop.xlane.xlu1 %256  ;;  %v302_v25 = vpop.xlane.xlu0 %301 }
  0xdc   : > { %v423_v49 = vsel %vm378_vm1, %v257_v24, -inf  ;;  %v452_v57 = vsel %vm378_vm1, %v302_v25, -inf  ;;  %v510_v25 = vshrl.u32 %v507_v44, 7 }
  0xdd   : > { %v424_v4 = vmax.f32 %v422_v56, %v423_v49  ;;  %v453_v16 = vmax.f32 %v451_v0, %v452_v57 }
  0xde   : > { %v511_v33 = vsub.s32 %v508_v5, %v510_v25 }
  0xdf   : > { %v305_v38 = vpop.xlane.xlu1 %304  ;;  %v350_v39 = vpop.xlane.xlu0 %349 }
  0xe0   : > { %v483_v60 = vsel %vm378_vm1, %v350_v39, -inf  ;;  %v454_v8 = vsel %vm378_vm1, %v305_v38, -inf }
  0xe1   : > { %v484_v17 = vmax.f32 %v482_v1, %v483_v60  ;;  %v455_v11 = vmax.f32 %v453_v16, %v454_v8 }
  0xe3   : > { %v353_v42 = vpop.xlane.xlu1 %352  ;;  %v260_v43 = vpop.xlane.xlu0 %259 }
  0xe4   : > { %v425_v61 = vsel %vm378_vm1, %v260_v43, -inf  ;;  %v485_v9 = vsel %vm378_vm1, %v353_v42, -inf }
  0xe5   : > { %v426_v20 = vmax.f32 %v424_v4, %v425_v61  ;;  %v486_v42 = vmax.f32 %v484_v17, %v485_v9 }
  0xe7   : > { %v263_v46 = vpop.xlane.xlu1 %262  ;;  %v308_v47 = vpop.xlane.xlu0 %307 }
  0xe8   : > { %v427_v12 = vsel %vm378_vm1, %v263_v46, -inf  ;;  %v456_v39 = vsel %vm378_vm1, %v308_v47, -inf }
  0xe9   : > { %v428_v14 = vmax.f32 %v426_v20, %v427_v12 }
  0xeb   : > { %v894_v50 = vpop.xlane.xlu1 %310  ;;  %v356_v51 = vpop.xlane.xlu0 %355 }
  0xec   : > { %v487_v43 = vsel %vm378_vm1, %v356_v51, -inf  ;;  %v457_v51 = vmax.f32 %v455_v11, %v456_v39 }
  0xed   : > { %v488_v19 = vmax.f32 %v486_v42, %v487_v43 }
  0xef   : > { %v896_v54 = vpop.xlane.xlu1 %358  ;;  %v266_v55 = vpop.xlane.xlu0 %265 }
  0xf0   : > { %v429_v6 = vsel %vm378_vm1, %v266_v55, -inf  ;;  %v489_v15 = vsel %vm378_vm1, %v896_v54, -inf }
  0xf1   : > { %v430_v55 = vmax.f32 %v428_v14, %v429_v6  ;;  %v490_v27 = vmax.f32 %v488_v19, %v489_v15 }
  0xf3   : > { %v898_v58 = vpop.xlane.xlu1 %313  ;;  %v221_v59 = vpop.xlane.xlu0 %220 }
  0xf4   : > { %v400_v13 = vsel %vm378_vm1, %v221_v59, -inf  ;;  %v458_v59 = vsel %vm378_vm1, %v894_v50, -inf  ;;  %v460_v26 = vsel %vm378_vm1, %v898_v58, -inf }
  0xf5   : > { %v401_v46 = vmax.f32 %v885_v36, %v400_v13 }
  0xf7   : > { %v900_v62 = vpop.xlane.xlu1 %361  ;;  %v269_v63 = vpop.xlane.xlu0 %268 }
  0xf8   : > { %v431_v18 = vsel %vm378_vm1, %v269_v63, -inf  ;;  %v491_v36 = vsel %vm378_vm1, %v900_v62, -inf  ;;  %v459_v63 = vmax.f32 %v457_v51, %v458_v59 }
  0xf9   : > { %v432_v28 = vmax.f32 %v430_v55, %v431_v18  ;;  %v492_v62 = vmax.f32 %v490_v27, %v491_v36 }
  0xfa   : > { %v461_v37 = vmax.f32 %v459_v63, %v460_v26 }
  0xfb   : > { %v902_v2 = vpop.xlane.xlu1 %316  ;;  %v224_v3 = vpop.xlane.xlu0 %223 }
  0xfc   : > { %v402_v38 = vsel %vm378_vm1, %v224_v3, -inf  ;;  %v462_v31 = vsel %vm378_vm1, %v902_v2, -inf }
  0xfd   : > { %v403_v22 = vmax.f32 %v401_v46, %v402_v38 }
  0xff   : > { %v905_v7 = vpop.xlane.xlu1 %364  ;;  %v907_v10 = vpop.xlane.xlu0 %271 }
 0x100   : > { %v433_v50 = vsel %vm378_vm1, %v907_v10, -inf  ;;  %v493_v32 = vsel %vm378_vm1, %v905_v7, -inf  ;;  %v463_v7 = vmax.f32 %v461_v37, %v462_v31 }
 0x101   : > { %v434_v40 = vmax.f32 %v432_v28, %v433_v50  ;;  %v494_v52 = vmax.f32 %v492_v62, %v493_v32 }
 0x103   : > { %v915_v29 = vpop.xlane.xlu1 %319  ;;  %v227_v30 = vpop.xlane.xlu0 %226 }
 0x104   : > { %v404_v47 = vsel %vm378_vm1, %v227_v30, -inf  ;;  %v464_v45 = vsel %vm378_vm1, %v915_v29, -inf }
 0x105   : > { %v405_v30 = vmax.f32 %v403_v22, %v404_v47  ;;  %v465_v29 = vmax.f32 %v463_v7, %v464_v45 }
 0x107   : > { %v368_v34 = vpop.xlane.xlu1 %367  ;;  %v275_v35 = vpop.xlane.xlu0 %274 }
 0x108   : > { %v435_v58 = vsel %vm378_vm1, %v275_v35, -inf  ;;  %v495_v48 = vsel %vm378_vm1, %v368_v34, -inf }
 0x109   : > { %v436_v53 = vmax.f32 %v434_v40, %v435_v58  ;;  %v496_v60 = vmax.f32 %v494_v52, %v495_v48 }
 0x10b   : > { %v323_v21 = vpop.xlane.xlu1 %322  ;;  %v230_v24 = vpop.xlane.xlu0 %229 }
 0x10c   : > { %v406_v54 = vsel %vm378_vm1, %v230_v24, -inf  ;;  %v466_v35 = vsel %vm378_vm1, %v323_v21, -inf }
 0x10d   : > { %v407_v10 = vmax.f32 %v405_v30, %v406_v54  ;;  %v467_v9 = vmax.f32 %v465_v29, %v466_v35 }
 0x10f   : > { %v371_v3 = vpop.xlane.xlu1 %370  ;;  %v278_v23 = vpop.xlane.xlu0 %277 }
 0x110   : > { %v437_v2 = vsel %vm378_vm1, %v278_v23, -inf  ;;  %v497_v57 = vsel %vm378_vm1, %v371_v3, -inf }
 0x111   : > { %v438_v34 = vmax.f32 %v436_v53, %v437_v2  ;;  %v498_v12 = vmax.f32 %v496_v60, %v497_v57 }
 0x113   : > { %v326_v41 = vpop.xlane.xlu1 %325  ;;  %v233_v44 = vpop.xlane.xlu0 %232 }
 0x114   : > { %v408_v49 = vsel %vm378_vm1, %v233_v44, -inf  ;;  %v468_v4 = vsel %vm378_vm1, %v326_v41, -inf }
 0x115   : > { %v409_v56 = vmax.f32 %v407_v10, %v408_v49  ;;  %v469_v16 = vmax.f32 %v467_v9, %v468_v4 }
 0x117   : > { %v512_v61 = vrot.slane %v409_v56, %v511_v33  ;;  %v374_v0 = vpop.xlane.xlu1 %373  ;;  %v281_v1 = vpop.xlane.xlu0 %280 }
 0x118   : > { %v499_v5 = vsel %vm378_vm1, %v374_v0, -inf  ;;  %v439_v8 = vsel %vm378_vm1, %v281_v1, -inf }
 0x119   : > { %530 = vst.msk [vmem:[%s119_s15] sm:$0x1] %vm529_vm2, %v512_v61  ;;  %v440_v13 = vmax.f32 %v438_v34, %v439_v8  ;;  %v500_v17 = vmax.f32 %v498_v12, %v499_v5 }
 0x11b   : > { %v516_v20 = vrot.slane %v440_v13, %v511_v33  ;;  %v377_v21 = vpop.xlane.xlu1 %376  ;;  %v329_v24 = vpop.xlane.xlu0 %328 }
 0x11c   : > { %v501_v25 = vsel %vm378_vm1, %v377_v21, -inf  ;;  %v470_v39 = vsel %vm378_vm1, %v329_v24, -inf }
 0x11d   : > { %531 = vst.msk [vmem:[%s119_s15 + $0x1] sm:$0x1] %vm529_vm2, %v516_v20  ;;  %v502_v43 = vmax.f32 %v500_v17, %v501_v25  ;;  %v471_v6 = vmax.f32 %v469_v16, %v470_v39 }
 0x11f   : > { %v524_v38 = vrot.slane %v502_v43, %v511_v33  ;;  %v520_v11 = vrot.slane %v471_v6, %v511_v33 }
 0x121   : > { %532 = vst.msk [vmem:[%s119_s15 + $0x2] sm:$0x1] %vm529_vm2, %v520_v11  ;;  %533 = vst.msk [vmem:[%s119_s15 + $0x3] sm:$0x1] %vm529_vm2, %v524_v38 }
 0x122 PF: > { %s11_s6 = sadd.s32 1, %s610_s6  }
 0x123   : > { %p8_p4 = scmp.ge.s32.totalorder %s11_s6, 4  }
 0x125   :  { %10 = sbr.rel (!%p8_p4) target bundleno = 1 (0x1), region = 54 }

</bundles_post_ra>
